<compile_context>
chip_gen: v6e
topology: v6e:2x2x1
jax: 0.10.0
libtpu: 0.0.40
codegen_flags: <defaults>
</compile_context>

<pallas_src>
import functools
import math

import jax
import jax.numpy as jnp
from jax import lax
from jax.experimental import pallas as pl
from jax.experimental.pallas import tpu as pltpu


def _round_up(a: int, b: int) -> int:
    return -(-a // b) * b


def _masked_bn_eval_kernel(x_ref, m_ref, sel_ref, shift_ref, o_ref, *, k):
    """out = x * (inv_mask * scale) + shift, in the lane-folded layout.

    x_ref:     (tile, k*C)  k consecutive (t, b) rows folded into the lane axis
    m_ref:     (tile, k)    inverse padding mask (1 = keep, 0 = padded)
    sel_ref:   (k,   k*C)   sel[j, j*C + c] = scale[c], zeros elsewhere
    shift_ref: (1,   k*C)   per-channel shift, tiled k times
    """
    if k == 1:
        masked_scale = m_ref[...] * sel_ref[...]                     # (tile, C)
    else:
        # masked_scale[r, l] = inv_mask[r, l // C] * scale[l % C]  (tiny MXU op)
        masked_scale = jnp.dot(m_ref[...], sel_ref[...],
                               preferred_element_type=jnp.float32)   # (tile, k*C)
    o_ref[...] = (x_ref[...] * masked_scale + shift_ref[...]).astype(o_ref.dtype)


def masked_batch_norm_eval(x, padding_mask, weight, bias, running_mean,
                           running_var, eps=1e-5, target_block_bytes=4 << 20):
    """Eval-mode MaskedBatchNorm forward.

    x:            (T, B, C) float32/bfloat16
    padding_mask: (B, T), 1 where padded (fairseq convention), any dtype
    weight/bias/running_mean/running_var: (C,)
    returns:      (T, B, C), same dtype as x
    """
    T, B, C = x.shape
    N = T * B
    out_dtype = x.dtype
    itemsize = jnp.dtype(x.dtype).itemsize

    # Grid-invariant per-channel affine params, computed once in float32.
    scale = ((weight.astype(jnp.float32) + 1.0)
             * lax.rsqrt(running_var.astype(jnp.float32) + eps))            # (C,)
    shift = bias.astype(jnp.float32) - running_mean.astype(jnp.float32) * scale

    # Fold k rows into the lane axis so the kernel's last dim is 128-aligned
    # (lane-dense vld/vst).  k == 1 when C is already a multiple of 128.
    k = 1 if C % 128 == 0 else 128 // math.gcd(C, 128)
    KC = k * C

    # Block sizing: ~target_block_bytes of x per grid step (multiple of 8 rows).
    n_fold = -(-N // k)
    rows_per_block = max(8, (target_block_bytes // (KC * itemsize)) // 8 * 8)
    # Keep at least 4 blocks when there is enough data (v7x megacore sharding).
    if n_fold >= 4 * 8 and -(-n_fold // rows_per_block) < 4:
        rows_per_block = max(8, _round_up(-(-n_fold // 4), 8))
    rows_per_block = min(rows_per_block, _round_up(n_fold, 8))
    n_fold_pad = _round_up(n_fold, rows_per_block)
    n_blocks = n_fold_pad // rows_per_block
    N_pad = n_fold_pad * k

    x2 = x.reshape(N, C)
    # inverse_mask = 1 - padding_mask; row n = t*B + b (matches x.reshape(N, C)).
    inv = (1.0 - padding_mask.astype(jnp.float32)).T.reshape(N)
    if N_pad != N:  # ragged T*B: pad with zero rows / zero mask (sliced off below)
        x2 = jnp.pad(x2, ((0, N_pad - N), (0, 0)))
        inv = jnp.pad(inv, (0, N_pad - N))
    xw = x2.reshape(n_fold_pad, KC)          # free row-major reshape
    mw = inv.reshape(n_fold_pad, k)

    # sel[j, j*C + c] = scale[c]; (inv_mask @ sel) gives the lane-wide masked scale.
    sel = (jnp.eye(k, dtype=jnp.float32)[:, :, None]
           * scale[None, None, :]).reshape(k, KC)
    shift_wide = jnp.tile(shift, k).reshape(1, KC)

    kernel = functools.partial(_masked_bn_eval_kernel, k=k)
    out_w = pl.pallas_call(
        kernel,
        out_shape=jax.ShapeDtypeStruct((n_fold_pad, KC), out_dtype),
        grid_spec=pltpu.PrefetchScalarGridSpec(
            num_scalar_prefetch=0,
            grid=(n_blocks,),
            in_specs=[
                pl.BlockSpec((rows_per_block, KC), lambda i: (i, 0)),  # x (folded)
                pl.BlockSpec((rows_per_block, k), lambda i: (i, 0)),   # inverse mask
                pl.BlockSpec((k, KC), lambda i: (0, 0)),               # masked-scale selector (resident)
                pl.BlockSpec((1, KC), lambda i: (0, 0)),               # shift (resident)
            ],
            out_specs=pl.BlockSpec((rows_per_block, KC), lambda i: (i, 0)),
        ),
        compiler_params=pltpu.CompilerParams(
            dimension_semantics=("parallel",),
            vmem_limit_bytes=32 << 20),
    )(xw, mw, sel, shift_wide)

    return out_w.reshape(N_pad, C)[:N].reshape(T, B, C)


if __name__ == "__main__":
    key = jax.random.PRNGKey(0)
    k_x, k_w, k_b, k_m, k_v = jax.random.split(key, 5)

    # Small shapes consistent with the module: seq T=8, batch B=4, num_features C=32.
    T, B, C = 8, 4, 32
    eps = 1e-5

    x = jax.random.normal(k_x, (T, B, C), dtype=jnp.float32)

    # padding_mask: (B, T), 1.0 at padded positions (fairseq convention).
    lengths = jnp.array([8, 6, 4, 7])
    padding_mask = (jnp.arange(T)[None, :] >= lengths[:, None]).astype(jnp.float32)

    # Deterministic non-trivial parameters / buffers (shapes from __init__).
    weight = 0.1 * jax.random.normal(k_w, (C,), dtype=jnp.float32)
    bias = 0.1 * jax.random.normal(k_b, (C,), dtype=jnp.float32)
    running_mean = 0.5 * jax.random.normal(k_m, (C,), dtype=jnp.float32)
    running_var = jax.nn.softplus(jax.random.normal(k_v, (C,), dtype=jnp.float32)) + 0.5

    out = masked_batch_norm_eval(x, padding_mask, weight, bias,
                                 running_mean, running_var, eps=eps)
    out = jax.block_until_ready(out)

    # Pure-JAX reference of the eval branch:
    #   x_masked = x * (1 - padding_mask);  out = (x_masked - mean) * rsqrt(var+eps) * (w+1) + b
    inv = (1.0 - padding_mask).T[:, :, None]                # (T, B, 1)
    x_masked = x * inv
    invstd = 1.0 / jnp.sqrt(running_var + eps)
    ref = (x_masked - running_mean) * invstd * (weight + 1.0) + bias

    assert out.shape == (T, B, C) and out.dtype == x.dtype
    assert jnp.allclose(out, ref, atol=1e-5, rtol=1e-5)
    print("KERNEL_OK")
</pallas_src>

<mosaic_0001>
module attributes {stable_mosaic.version = 11 : i64} {
  func.func @_masked_bn_eval_kernel(%arg0: i32, %arg1: memref<8x128xf32, #tpu.memory_space<vmem>>, %arg2: memref<8x4xf32, #tpu.memory_space<vmem>>, %arg3: memref<4x128xf32, #tpu.memory_space<vmem>>, %arg4: memref<1x128xf32, #tpu.memory_space<vmem>>, %arg5: memref<8x128xf32, #tpu.memory_space<vmem>>) attributes {dimension_semantics = [#tpu.dimension_semantics<parallel>], iteration_bounds = array<i64: 1>, scalar_prefetch = 0 : i64, scratch_operands = 0 : i64, tpu.core_type = #tpu.core_type<tc>, window_params = [{transform_indices = @transform_0, window_bounds = array<i64: 8, 128>}, {transform_indices = @transform_1, window_bounds = array<i64: 8, 4>}, {pipeline_mode = #tpu.pipeline_mode<synchronous>, transform_indices = @transform_2, window_bounds = array<i64: 4, 128>}, {pipeline_mode = #tpu.pipeline_mode<synchronous>, transform_indices = @transform_3, window_bounds = array<i64: 1, 128>}, {transform_indices = @transform_4, window_bounds = array<i64: 8, 128>}]} {
    %c0 = arith.constant 0 : index
    %c0_0 = arith.constant 0 : index
    %0 = vector.load %arg2[%c0, %c0_0] : memref<8x4xf32, #tpu.memory_space<vmem>>, vector<8x4xf32>
    %c0_1 = arith.constant 0 : index
    %c0_2 = arith.constant 0 : index
    %1 = vector.load %arg3[%c0_1, %c0_2] : memref<4x128xf32, #tpu.memory_space<vmem>>, vector<4x128xf32>
    %cst = arith.constant dense<0.000000e+00> : vector<8x128xf32>
    %2 = tpu.matmul %0, %1, %cst {dimension_numbers = #tpu.dot_dimension_numbers<[1], [0], [0], [1], [0, 0, 1, 1], [], []>} : vector<8x4xf32>, vector<4x128xf32>, vector<8x128xf32> -> vector<8x128xf32>
    %c0_3 = arith.constant 0 : index
    %c0_4 = arith.constant 0 : index
    %3 = vector.load %arg1[%c0_3, %c0_4] : memref<8x128xf32, #tpu.memory_space<vmem>>, vector<8x128xf32>
    %4 = arith.mulf %3, %2 : vector<8x128xf32>
    %c0_5 = arith.constant 0 : index
    %c0_6 = arith.constant 0 : index
    %5 = vector.load %arg4[%c0_5, %c0_6] : memref<1x128xf32, #tpu.memory_space<vmem>>, vector<1x128xf32>
    %6 = vector.broadcast %5 : vector<1x128xf32> to vector<8x128xf32>
    %7 = arith.addf %4, %6 : vector<8x128xf32>
    %c0_7 = arith.constant 0 : index
    %c0_8 = arith.constant 0 : index
    %8 = vector.load %arg5[%c0_7, %c0_8] : memref<8x128xf32, #tpu.memory_space<vmem>>, vector<8x128xf32>
    tpu.vector_store %arg5[%c0_7, %c0_8], %7 {strides = array<i32>} : memref<8x128xf32, #tpu.memory_space<vmem>>, vector<8x128xf32>,
    return
  }
  func.func @transform_0(%arg0: i32) -> (i32, i32) {
    %c0_i32 = arith.constant 0 : i32
    %c0_i32_0 = arith.constant 0 : i32
    return %arg0, %c0_i32 : i32, i32
  }
  func.func @transform_1(%arg0: i32) -> (i32, i32) {
    %c0_i32 = arith.constant 0 : i32
    %c0_i32_0 = arith.constant 0 : i32
    return %arg0, %c0_i32 : i32, i32
  }
  func.func @transform_2(%arg0: i32) -> (i32, i32) {
    %c0_i32 = arith.constant 0 : i32
    %c0_i32_0 = arith.constant 0 : i32
    %c0_i32_1 = arith.constant 0 : i32
    return %c0_i32, %c0_i32_0 : i32, i32
  }
  func.func @transform_3(%arg0: i32) -> (i32, i32) {
    %c0_i32 = arith.constant 0 : i32
    %c0_i32_0 = arith.constant 0 : i32
    %c0_i32_1 = arith.constant 0 : i32
    return %c0_i32, %c0_i32_0 : i32, i32
  }
  func.func @transform_4(%arg0: i32) -> (i32, i32) {
    %c0_i32 = arith.constant 0 : i32
    %c0_i32_0 = arith.constant 0 : i32
    return %arg0, %c0_i32 : i32, i32
  }
}

</mosaic_0001>

<bundles_post_ra>
// kernel: tpu_custom_call.1
= control target key start
LH: loop header
LB: loop body
LE: loop exit
PB: predicated region body
PF: predicated region fallthrough
CT: control target
= control target key end

     0   :  { %vm24_vm0 = vcmask 1043456   ;;  %v158_v2 = vmov 0.0   ;;  %vm159_vm1 = vmmov 0   ;;  %vm20_vm2 = vcmask 31744   ;;  %s201_s0 = inlined_call_operand.vmem [shape: f32[8,128], index: 0, kind: input, shape index: {}]   ;;  %s202_s1 = inlined_call_operand.vmem [shape: f32[8,4], index: 1, kind: input, shape index: {}]   ;;  %s203_s2 = inlined_call_operand.vmem [shape: f32[4,128], index: 2, kind: input, shape index: {}]   ;;  %s204_s3 = inlined_call_operand.vmem [shape: f32[1,128], index: 3, kind: input, shape index: {}]   ;;  %s205_s4 = inlined_call_operand.hbm [shape: f32[8,128], index: 4, kind: output, shape index: {}]  }
   0x1   :  { %v19_v0 = vld [vmem:[%s203_s2] sm:$0xf]  ;;  %128 = vmatprep.subr.mxu0 %v158_v2  ;;  %130 = vmatprep.mubr.msk.f32.mxu0 %vm159_vm1, %v158_v2 }
   0x2   :  { %v18_v1 = vld [vmem:[%s202_s1] sm:$0xff] }
   0x3   :  { %9 = vsyncpa [#allocation3], 0  ;;  %129 = vmatpush3.msk.msra.mxu0 %vm24_vm0, %v19_v0  ;;  %v98_v3 = vld [vmem:[%s201_s0] sm:$0xff]  ;;  %s160_s22 = smov [#allocation2]  }
   0x4   :  { %131 = vmatmul.mubr.msk.f32.vlgmr.msra.gmra.mxu0 %vm20_vm2, %v18_v1  ;;  %v125_v5 = vld [vmem:[%s204_s3] ss:$0 sm:$0xff]  ;;  %s115_s23 = sshll.u32 %s160_s22, 4  ;;  %s116_s23 = int_to_ptr.vmem [resolvable:$true] %s115_s23 }
   0x5   :  { %s136_s1 = scalar_lea.vmem %s116_s23, 128  ;;  %p141_p1 = scmp.lt.s32.totalorder %s116_s23, %s116_s23 }
   0x6   :  { %p137_p0 = scmp.ne.s32.totalorder %s116_s23, %s136_s1  ;;  %p142_p2 = scmp.lt.s32.totalorder %s136_s1, %s136_s1 }
   0x8   :  { %p143_p3 = por %p142_p2, %p141_p1 }
   0xa   :  { %p144_p4 = pnand %p143_p3, %p137_p0 }
  0xc4   :  { %v94_v4 = vpop.f32.mrf.mxu0 }
  0xc5   :  { %v99_v6 = vmul.f32 %v98_v3, %v94_v4 }
  0xc6   :  { %v132_v7 = vpop.f32.mrf.mxu0 }
  0xc7   :  { %v107_v8 = vadd.f32 %v125_v5, %v99_v6 }
  0xc9   :  { %108 = vst [vmem:[#allocation2] sm:$0xff] %v107_v8 }
  0xca   :  { %147 = shalt.err (!%p144_p4)
}
  0xcb   :  { %118 = dma.vmem_to_hbm [thread:$0]  %s116_s23, 128, %s205_s4, [#allocation3]  }
  0xcc   :  { %156 = dma.done.wait [#allocation3], 128  }
  0xcd   :  { %157 = vsyncadd [#allocation3], 4294967168 }
  0xce   :  { %122 = vsyncpa [#allocation3], 1 }

</bundles_post_ra>
